<compile_context>
chip_gen: v5e
topology: v5e:2x2
jax: 0.10.0
libtpu: 0.0.40
codegen_flags: <defaults>
</compile_context>

<pallas_src>
import math
from functools import partial

import jax
import jax.numpy as jnp
from jax.experimental import pallas as pl
from jax.experimental.pallas import tpu as pltpu


def _round_up(a, m):
    return ((a + m - 1) // m) * m


def _disc_kernel(xin_ref, w_ref, b_ref, w4_ref, out_ref, *, act_dtype):
    """All activations are lane-dense [features, TB].

    xin_ref: [D+1, TB]   (row D holds raw t; the /4 is folded into w_ref[0])
    w_ref:   [3, H, H]   page 0 = W1^T zero-padded to H cols, 1 = W2^T, 2 = W3^T
    b_ref:   [H, 3]      columns b1, b2, b3
    w4_ref:  [1, H+1]    [W4^T | b4]
    out_ref: [1, TB]
    """
    d1 = xin_ref.shape[0]
    h_dim = w_ref.shape[1]

    def act(v):
        # act_dtype=float32 -> identity casts; bf16 option for v6e/v7x EUP.
        return jnp.tanh(v.astype(act_dtype)).astype(jnp.float32)

    b = b_ref[...]                                          # [H, 3]
    w4b4 = w4_ref[...]                                      # [1, H+1]

    h = jnp.dot(w_ref[0][:, :d1], xin_ref[...],
                preferred_element_type=jnp.float32)         # [H, TB]
    h = act(h + b[:, 0:1])
    h = act(jnp.dot(w_ref[1], h, preferred_element_type=jnp.float32) + b[:, 1:2])
    h = act(jnp.dot(w_ref[2], h, preferred_element_type=jnp.float32) + b[:, 2:3])
    out_ref[...] = (jnp.dot(w4b4[:, :h_dim], h, preferred_element_type=jnp.float32)
                    + w4b4[:, h_dim:h_dim + 1])


def init_params(key, data_dim=2, hidden_dim=32):
    """PyTorch nn.Linear-style init; weights [fan_in, fan_out], biases [1, fan_out]."""
    dims = [(data_dim + 1, hidden_dim),
            (hidden_dim, hidden_dim),
            (hidden_dim, hidden_dim),
            (hidden_dim, 1)]
    params = []
    for fan_in, fan_out in dims:
        key, kw, kb = jax.random.split(key, 3)
        bound = 1.0 / math.sqrt(fan_in)
        w = jax.random.uniform(kw, (fan_in, fan_out), jnp.float32, -bound, bound)
        b = jax.random.uniform(kb, (1, fan_out), jnp.float32, -bound, bound)
        params.append((w, b))
    return params


def pack_params(params):
    """One-time re-layout (hoisted out of the per-call forward): transpose to
    [out, in], fold the t/4 scale into W1's t-row, pack into 3 resident slabs."""
    (w1, b1), (w2, b2), (w3, b3), (w4, b4) = params
    d1, h = w1.shape                                         # d1 = data_dim + 1
    w1t = w1.T.astype(jnp.float32)                           # [H, D+1]
    w1t = w1t.at[:, d1 - 1].multiply(0.25)                   # fold t/4 into t-row
    w_slab = jnp.zeros((3, h, h), jnp.float32)
    w_slab = w_slab.at[0, :, :d1].set(w1t)
    w_slab = w_slab.at[1].set(w2.T.astype(jnp.float32))
    w_slab = w_slab.at[2].set(w3.T.astype(jnp.float32))
    b_slab = jnp.concatenate([b1.T, b2.T, b3.T], axis=1).astype(jnp.float32)  # [H, 3]
    w4b4 = jnp.concatenate([w4.T, b4.T], axis=1).astype(jnp.float32)          # [1, H+1]
    return (w_slab, b_slab, w4b4)


@partial(jax.jit, static_argnames=("use_bf16_act",))
def toy_discriminator_forward(x, t, packed, use_bf16_act=False):
    """x: [B, data_dim], t: [B]. Returns (out, out), out: [B, 1]."""
    w_slab, b_slab, w4b4 = packed
    x = x.astype(jnp.float32)
    t = t.astype(jnp.float32)
    B, D = x.shape
    H = w_slab.shape[1]
    D1 = D + 1

    # Lane-dense batch tile: 128-aligned, capped at 2048 (VMEM use stays tiny on
    # every generation incl. v7x's 64 MiB), and >=2 grid steps whenever B > 128
    # so the "parallel" axis can shard across v7x's two TensorCores.
    TB = min(2048, max(128, _round_up((B + 1) // 2, 128)))
    B_pad = _round_up(B, TB)
    grid = (B_pad // TB,)

    # Single merged, transposed, padded input slab (fuses into one XLA op under jit).
    xin = jnp.concatenate([x, t[:, None]], axis=1).T                # [D1, B]
    xin = jnp.pad(xin, ((0, 0), (0, B_pad - B)))                    # [D1, B_pad]

    cost = pl.CostEstimate(
        flops=2 * B_pad * (D1 * H + 2 * H * H + H),
        transcendentals=3 * H * B_pad,
        bytes_accessed=4 * (D1 * B_pad + B_pad + 3 * H * H + 3 * H + H + 1),
    )

    kernel = partial(_disc_kernel,
                     act_dtype=jnp.bfloat16 if use_bf16_act else jnp.float32)

    outT = pl.pallas_call(
        kernel,
        out_shape=jax.ShapeDtypeStruct((1, B_pad), jnp.float32),
        grid=grid,
        in_specs=[
            pl.BlockSpec((D1, TB), lambda i: (0, i)),               # batch tile
            pl.BlockSpec((3, H, H), lambda i: (0, 0, 0)),           # resident weights
            pl.BlockSpec((H, 3), lambda i: (0, 0)),                 # resident biases
            pl.BlockSpec((1, H + 1), lambda i: (0, 0)),             # resident w4|b4
        ],
        out_specs=pl.BlockSpec((1, TB), lambda i: (0, i)),
        compiler_params=pltpu.CompilerParams(
            dimension_semantics=("parallel",)),
        cost_estimate=cost,
    )(xin, w_slab, b_slab, w4b4)

    # Kernel output is lane-dense [1, B_pad]; the slice + transpose back to the
    # module's [B, 1] layout fuses into this jit.
    out = outT[:, :B].T
    return (out, out)


def _reference_forward(x, t, params):
    """Pure-JAX reference for correctness checking."""
    x = x.astype(jnp.float32)
    t = t.astype(jnp.float32)
    h = jnp.concatenate([x, t[:, None] / 4.0], axis=1)
    (w1, b1), (w2, b2), (w3, b3), (w4, b4) = params
    h = jnp.tanh(h @ w1 + b1)
    h = jnp.tanh(h @ w2 + b2)
    h = jnp.tanh(h @ w3 + b3)
    out = h @ w4 + b4
    return (out, out)


if __name__ == "__main__":
    key = jax.random.PRNGKey(0)
    k_params, k_x, k_t = jax.random.split(key, 3)

    data_dim, hidden_dim, batch = 2, 32, 8
    params = init_params(k_params, data_dim=data_dim, hidden_dim=hidden_dim)
    packed = pack_params(params)          # one-time parameter re-layout/packing

    x = jax.random.normal(k_x, (batch, data_dim), jnp.float32)
    t = jax.random.uniform(k_t, (batch,), jnp.float32, 0.0, 4.0)

    out, out2 = toy_discriminator_forward(x, t, packed)
    jax.block_until_ready(out)
    ref, _ = _reference_forward(x, t, params)
    assert out.shape == (batch, 1)
    assert jnp.allclose(out, ref, atol=1e-5, rtol=1e-5)
    assert jnp.array_equal(out, out2)

    # Larger batch: exercises the multi-step (>=2) parallel grid + padding path.
    k_x2, k_t2 = jax.random.split(k_x)
    x2 = jax.random.normal(k_x2, (1000, data_dim), jnp.float32)
    t2 = jax.random.uniform(k_t2, (1000,), jnp.float32, 0.0, 4.0)
    out_big, _ = toy_discriminator_forward(x2, t2, packed)
    jax.block_until_ready(out_big)
    ref_big, _ = _reference_forward(x2, t2, params)
    assert jnp.allclose(out_big, ref_big, atol=1e-5, rtol=1e-5)

    # Optional bf16-activation path (v6e/v7x EUP); looser tolerance by design.
    out_bf16, _ = toy_discriminator_forward(x2, t2, packed, use_bf16_act=True)
    jax.block_until_ready(out_bf16)
    assert jnp.allclose(out_bf16, ref_big, atol=1e-1, rtol=1e-1)

    print("KERNEL_OK")
</pallas_src>

<mosaic_0001>
module attributes {stable_mosaic.version = 11 : i64} {
  func.func @_disc_kernel(%arg0: i32, %arg1: memref<3x128xf32, #tpu.memory_space<vmem>>, %arg2: memref<3x32x32xf32, #tpu.memory_space<vmem>>, %arg3: memref<32x3xf32, #tpu.memory_space<vmem>>, %arg4: memref<1x33xf32, #tpu.memory_space<vmem>>, %arg5: memref<1x128xf32, #tpu.memory_space<vmem>>) attributes {dimension_semantics = [#tpu.dimension_semantics<parallel>], iteration_bounds = array<i64: 1>, scalar_prefetch = 0 : i64, scratch_operands = 0 : i64, tpu.core_type = #tpu.core_type<tc>, window_params = [{transform_indices = @transform_0, window_bounds = array<i64: 3, 128>}, {pipeline_mode = #tpu.pipeline_mode<synchronous>, transform_indices = @transform_1, window_bounds = array<i64: 3, 32, 32>}, {pipeline_mode = #tpu.pipeline_mode<synchronous>, transform_indices = @transform_2, window_bounds = array<i64: 32, 3>}, {pipeline_mode = #tpu.pipeline_mode<synchronous>, transform_indices = @transform_3, window_bounds = array<i64: 1, 33>}, {transform_indices = @transform_4, window_bounds = array<i64: 1, 128>}]} {
    %c0 = arith.constant 0 : index
    %c0_0 = arith.constant 0 : index
    %0 = vector.load %arg3[%c0, %c0_0] : memref<32x3xf32, #tpu.memory_space<vmem>>, vector<32x3xf32>
    %c0_1 = arith.constant 0 : index
    %c0_2 = arith.constant 0 : index
    %1 = vector.load %arg4[%c0_1, %c0_2] : memref<1x33xf32, #tpu.memory_space<vmem>>, vector<1x33xf32>
    %c0_3 = arith.constant 0 : index
    %c0_4 = arith.constant 0 : index
    %c0_5 = arith.constant 0 : index
    %2 = vector.load %arg2[%c0_3, %c0_4, %c0_5] : memref<3x32x32xf32, #tpu.memory_space<vmem>>, vector<1x32x32xf32>
    %3 = vector.shape_cast %2 : vector<1x32x32xf32> to vector<32x32xf32>
    %4 = vector.extract_strided_slice %3 {offsets = [0, 0], sizes = [32, 3], strides = [1, 1]} : vector<32x32xf32> to vector<32x3xf32>
    %c0_6 = arith.constant 0 : index
    %c0_7 = arith.constant 0 : index
    %5 = vector.load %arg1[%c0_6, %c0_7] : memref<3x128xf32, #tpu.memory_space<vmem>>, vector<3x128xf32>
    %cst = arith.constant dense<0.000000e+00> : vector<32x128xf32>
    %6 = tpu.matmul %4, %5, %cst {dimension_numbers = #tpu.dot_dimension_numbers<[1], [0], [0], [1], [0, 0, 1, 1], [], []>} : vector<32x3xf32>, vector<3x128xf32>, vector<32x128xf32> -> vector<32x128xf32>
    %7 = vector.extract_strided_slice %0 {offsets = [0, 0], sizes = [32, 1], strides = [1, 1]} : vector<32x3xf32> to vector<32x1xf32>
    %8 = vector.broadcast %7 : vector<32x1xf32> to vector<32x128xf32>
    %9 = arith.addf %6, %8 : vector<32x128xf32>
    %10 = math.tanh %9 : vector<32x128xf32>
    %c1 = arith.constant 1 : index
    %c0_8 = arith.constant 0 : index
    %c0_9 = arith.constant 0 : index
    %11 = vector.load %arg2[%c1, %c0_8, %c0_9] : memref<3x32x32xf32, #tpu.memory_space<vmem>>, vector<1x32x32xf32>
    %12 = vector.shape_cast %11 : vector<1x32x32xf32> to vector<32x32xf32>
    %cst_10 = arith.constant dense<0.000000e+00> : vector<32x128xf32>
    %13 = tpu.matmul %12, %10, %cst_10 {dimension_numbers = #tpu.dot_dimension_numbers<[1], [0], [0], [1], [0, 0, 1, 1], [], []>} : vector<32x32xf32>, vector<32x128xf32>, vector<32x128xf32> -> vector<32x128xf32>
    %14 = vector.extract_strided_slice %0 {offsets = [0, 1], sizes = [32, 1], strides = [1, 1]} : vector<32x3xf32> to vector<32x1xf32>
    %15 = vector.broadcast %14 : vector<32x1xf32> to vector<32x128xf32>
    %16 = arith.addf %13, %15 : vector<32x128xf32>
    %17 = math.tanh %16 : vector<32x128xf32>
    %c2 = arith.constant 2 : index
    %c0_11 = arith.constant 0 : index
    %c0_12 = arith.constant 0 : index
    %18 = vector.load %arg2[%c2, %c0_11, %c0_12] : memref<3x32x32xf32, #tpu.memory_space<vmem>>, vector<1x32x32xf32>
    %19 = vector.shape_cast %18 : vector<1x32x32xf32> to vector<32x32xf32>
    %cst_13 = arith.constant dense<0.000000e+00> : vector<32x128xf32>
    %20 = tpu.matmul %19, %17, %cst_13 {dimension_numbers = #tpu.dot_dimension_numbers<[1], [0], [0], [1], [0, 0, 1, 1], [], []>} : vector<32x32xf32>, vector<32x128xf32>, vector<32x128xf32> -> vector<32x128xf32>
    %21 = vector.extract_strided_slice %0 {offsets = [0, 2], sizes = [32, 1], strides = [1, 1]} : vector<32x3xf32> to vector<32x1xf32>
    %22 = vector.broadcast %21 : vector<32x1xf32> to vector<32x128xf32>
    %23 = arith.addf %20, %22 : vector<32x128xf32>
    %24 = math.tanh %23 : vector<32x128xf32>
    %25 = vector.extract_strided_slice %1 {offsets = [0, 0], sizes = [1, 32], strides = [1, 1]} : vector<1x33xf32> to vector<1x32xf32>
    %cst_14 = arith.constant dense<0.000000e+00> : vector<1x128xf32>
    %26 = tpu.matmul %25, %24, %cst_14 {dimension_numbers = #tpu.dot_dimension_numbers<[1], [0], [0], [1], [0, 0, 1, 1], [], []>} : vector<1x32xf32>, vector<32x128xf32>, vector<1x128xf32> -> vector<1x128xf32>
    %27 = vector.extract_strided_slice %1 {offsets = [0, 32], sizes = [1, 1], strides = [1, 1]} : vector<1x33xf32> to vector<1x1xf32>
    %28 = vector.broadcast %27 : vector<1x1xf32> to vector<1x128xf32>
    %29 = arith.addf %26, %28 : vector<1x128xf32>
    %c0_15 = arith.constant 0 : index
    %c0_16 = arith.constant 0 : index
    %30 = vector.load %arg5[%c0_15, %c0_16] : memref<1x128xf32, #tpu.memory_space<vmem>>, vector<1x128xf32>
    tpu.vector_store %arg5[%c0_15, %c0_16], %29 {strides = array<i32>} : memref<1x128xf32, #tpu.memory_space<vmem>>, vector<1x128xf32>,
    return
  }
  func.func @transform_0(%arg0: i32) -> (i32, i32) {
    %c0_i32 = arith.constant 0 : i32
    %c0_i32_0 = arith.constant 0 : i32
    return %c0_i32, %arg0 : i32, i32
  }
  func.func @transform_1(%arg0: i32) -> (i32, i32, i32) {
    %c0_i32 = arith.constant 0 : i32
    %c0_i32_0 = arith.constant 0 : i32
    %c0_i32_1 = arith.constant 0 : i32
    %c0_i32_2 = arith.constant 0 : i32
    return %c0_i32, %c0_i32_0, %c0_i32_1 : i32, i32, i32
  }
  func.func @transform_2(%arg0: i32) -> (i32, i32) {
    %c0_i32 = arith.constant 0 : i32
    %c0_i32_0 = arith.constant 0 : i32
    %c0_i32_1 = arith.constant 0 : i32
    return %c0_i32, %c0_i32_0 : i32, i32
  }
  func.func @transform_3(%arg0: i32) -> (i32, i32) {
    %c0_i32 = arith.constant 0 : i32
    %c0_i32_0 = arith.constant 0 : i32
    %c0_i32_1 = arith.constant 0 : i32
    return %c0_i32, %c0_i32_0 : i32, i32
  }
  func.func @transform_4(%arg0: i32) -> (i32, i32) {
    %c0_i32 = arith.constant 0 : i32
    %c0_i32_0 = arith.constant 0 : i32
    return %c0_i32, %arg0 : i32, i32
  }
}

</mosaic_0001>

<bundles_post_ra>
// kernel: toy_discriminator_forward.1
= control target key start
LH: loop header
LB: loop body
LE: loop exit
PB: predicated region body
PF: predicated region fallthrough
CT: control target
= control target key end

     0   :  { %9 = vsyncpa [#allocation3], 0  ;;  %s369_s18 = smov [#allocation2]   ;;  %s370_s20 = smov 128   ;;  %s453_s0 = inlined_call_operand.vmem [shape: f32[3,128], index: 0, kind: input, shape index: {}]   ;;  %s454_s1 = inlined_call_operand.hbm [shape: f32[3,32,32], index: 1, kind: input, shape index: {}]   ;;  %s455_s2 = inlined_call_operand.vmem [shape: f32[32,3], index: 2, kind: input, shape index: {}]   ;;  %s456_s3 = inlined_call_operand.vmem [shape: f32[1,33], index: 3, kind: input, shape index: {}]   ;;  %s457_s4 = inlined_call_operand.vmem [shape: f32[1,128], index: 4, kind: output, shape index: {}]  }
   0x1   :  { %s16_s17 = sshll.u32 %s454_s1, 4  ;;  %s18_s19 = sshll.u32 %s369_s18, 4  ;;  %s17_s17 = int_to_ptr.hbm [resolvable:$true] %s16_s17  ;;  %s19_s19 = int_to_ptr.vmem [resolvable:$true] %s18_s19 }
   0x2   :  { %s371_s21 = smov 8  }
   0x3   :  { %24 = dma.hbm_to_vmem [thread:$0]  %s17_s17, 1536, %s19_s19, [#allocation3], %s370_s20, %s370_s20, %s371_s21  }
   0x4   :  { %367 = dma.done.wait [#allocation3], 1536  }
   0x5   :  { %368 = vsyncadd [#allocation3], 4294965760  ;;  %v372_v0 = vmov 0   ;;  %vm76_vm0 = vcmask 1042432   ;;  %vm63_vm1 = vcmask 23552   ;;  %v38_v2 = vld [vmem:[#allocation2] sm:$0xff] }
   0x6   :  { %310 = vset.pattern.permute.xlu1 %v372_v0  ;;  %309 = vset.pattern.permute.xlu0 %v372_v0  ;;  %v42_v1 = vld [vmem:[%s453_s0] sm:$0x7]  ;;  %v410_v3 = vld [vmem:[%s455_s2 + $0x8] sm:$0xff]  ;;  %v417_v4 = vld [vmem:[%s455_s2 + $0x18] sm:$0xff]  ;;  %v373_v15 = vmov 1   ;;  %vm134_vm2 = vcmask 261120  }
   0x7   :  { %280 = vmatpush.msk.msra.mxu0 %vm76_vm0, %v42_v1  ;;  %50 = vperm.xlu1 %310, %v410_v3   ;;  %v423_v5 = vld [vmem:[%s455_s2] sm:$0xff]  ;;  %v39_v6 = vld [vmem:[#allocation2 + $0x8] sm:$0xff]  ;;  %v35_v7 = vld [vmem:[%s455_s2 + $0x10] sm:$0xff]  ;;  %v374_v36 = vmov 2   ;;  %v375_v56 = vmov 32  }
   0x8   :  { %281 = vmatmul.msk.f32.vlgmr.msra.gmra.mxu0 %vm63_vm1, %v38_v2  ;;  %60 = vperm.xlu0 %309, %v417_v4   ;;  %v40_v8 = vld [vmem:[#allocation2 + $0x10] sm:$0xff]  ;;  %v41_v9 = vld [vmem:[#allocation2 + $0x18] sm:$0xff]  ;;  %v114_v26 = vld [vmem:[#allocation2 + $0x20] sm:$0xff] }
   0x9   :  { %311 = vset.pattern.permute.xlu2 %v373_v15  ;;  %v117_v27 = vld [vmem:[#allocation2 + $0x38] sm:$0xff]  ;;  %v115_v29 = vld [vmem:[#allocation2 + $0x28] sm:$0xff]  ;;  %v116_v30 = vld [vmem:[#allocation2 + $0x30] sm:$0xff] }
   0xa   :  { %131 = vperm.xlu2 %311, %v417_v4   ;;  %v181_v47 = vld [vmem:[#allocation2 + $0x40] sm:$0xff]  ;;  %v184_v48 = vld [vmem:[#allocation2 + $0x58] sm:$0xff]  ;;  %v182_v50 = vld [vmem:[#allocation2 + $0x48] sm:$0xff] }
   0xb   :  { %v183_v51 = vld [vmem:[#allocation2 + $0x50] sm:$0xff]  ;;  %v37_v55 = vld [vmem:[%s456_s3] sm:$0x1] }
   0xf   :  { %45 = vperm.xlu1 %310, %v423_v5  }
  0x10   :  { %282 = vmatmul.msk.f32.gmra.mxu0 %vm63_vm1, %v39_v6  ;;  %55 = vperm.xlu0 %309, %v35_v7  }
  0x12   :  { %127 = vperm.xlu2 %311, %v35_v7  }
  0x17   :  { %313 = vset.pattern.permute.xlu1 %v373_v15 }
  0x18   :  { %283 = vmatmul.msk.f32.gmra.mxu0 %vm63_vm1, %v40_v8  ;;  %312 = vset.pattern.permute.xlu0 %v373_v15 }
  0x19   :  { %119 = vperm.xlu1 %313, %v423_v5   ;;  %123 = vperm.xlu0 %312, %v410_v3  }
  0x1a   :  { %314 = vset.pattern.permute.xlu2 %v374_v36 }
  0x1b   :  { %198 = vperm.xlu2 %314, %v417_v4  }
  0x20   :  { %284 = vmatmul.msk.f32.gmra.mxu0 %vm63_vm1, %v41_v9 }
  0x21   :  { %316 = vset.pattern.permute.xlu0 %v374_v36  ;;  %315 = vset.pattern.permute.xlu1 %v374_v36 }
  0x22   :  { %186 = vperm.xlu0 %316, %v423_v5   ;;  %194 = vperm.xlu1 %315, %v35_v7  }
  0x23   :  { %190 = vperm.xlu2 %314, %v410_v3  }
  0x2a   :  { %317 = vset.pattern.permute.xlu1 %v375_v56  ;;  %318 = vset.pattern.permute.xlu0 %v375_v56 }
  0x2b   :  { %248 = vperm.xlu1 %317, %v37_v55  }
  0x64   :  { %v132_v32 = vpop.permute.xlu2 %131 }
  0x6c   :  { %v128_v40 = vpop.permute.xlu2 %127 }
  0x75   :  { %v199_v52 = vpop.permute.xlu2 %198 }
  0x79   :  { %v51_v13 = vpop.permute.xlu1 %50 }
  0x7a   :  { %v61_v12 = vpop.permute.xlu0 %60 }
  0x7d   :  { %v191_v60 = vpop.permute.xlu2 %190 }
  0x81   :  { %v46_v20 = vpop.permute.xlu1 %45 }
  0x82   :  { %v56_v16 = vpop.permute.xlu0 %55 }
  0x85   :  { %v97_v10 = vpop.f32.mrf.mxu0 }
  0x86   :  { %v98_v22 = vadd.f32 %v97_v10, %v46_v20 }
  0x8b   :  { %v124_v37 = vpop.permute.xlu0 %123  ;;  %v120_v39 = vpop.permute.xlu1 %119 }
  0x8d   :  { %v100_v11 = vpop.f32.mrf.mxu0 }
  0x8e   :  { %v101_v21 = vadd.f32 %v100_v11, %v51_v13 }
  0x94   :  { %v195_v61 = vpop.permute.xlu1 %194  ;;  %v187_v62 = vpop.permute.xlu0 %186 }
  0x95   :  { %v103_v14 = vpop.f32.mrf.mxu0 }
  0x96   :  { %v104_v18 = vadd.f32 %v103_v14, %v56_v16 }
  0x9d   :  { %v106_v17 = vpop.f32.mrf.mxu0  ;;  %v249_v6 = vpop.permute.xlu1 %248 }
  0x9e   :  { %v107_v19 = vadd.f32 %v106_v17, %v61_v12  ;;  %v251_v7 = vperm.slane %v249_v6, 0 }
  0xa0   :  { %319 = vtanh.f32 %v107_v19 }
  0xa1   :  { %321 = vtanh.f32 %v104_v18 }
  0xa2   :  { %323 = vtanh.f32 %v101_v21 }
  0xa3   :  { %325 = vtanh.f32 %v98_v22 }
  0xa6   :  { %v320_v23 = vpop.eup %319 }
  0xa7   :  { %159 = vmatpush.msra.mxu1 %v320_v23  ;;  %294 = vmatpush.msra.mxu3 %v320_v23  ;;  %v322_v24 = vpop.eup %321 }
  0xa8   :  { %v324_v25 = vpop.eup %323 }
  0xa9   :  { %160 = vmatpush.msra.mxu1 %v322_v24  ;;  %295 = vmatpush.msra.mxu3 %v322_v24  ;;  %v326_v28 = vpop.eup %325 }
  0xab   :  { %161 = vmatpush.msra.mxu1 %v324_v25  ;;  %296 = vmatpush.msra.mxu3 %v324_v25 }
  0xad   :  { %162 = vmatpush.msra.mxu1 %v326_v28  ;;  %297 = vmatpush.msra.mxu3 %v326_v28 }
  0xae   :  { %285 = vmatmul.msk.f32.vlgmr.msra.gmra.mxu1 %vm134_vm2, %v114_v26  ;;  %288 = vmatmul.msk.f32.vlgmr.msra.gmra.mxu3 %vm134_vm2, %v117_v27 }
  0xb6   :  { %286 = vmatmul.msk.f32.gmra.mxu1 %vm134_vm2, %v115_v29 }
  0xbe   :  { %287 = vmatmul.msk.f32.gmra.mxu1 %vm134_vm2, %v116_v30 }
 0x12b   :  { %v164_v31 = vpop.f32.mrf.mxu1 }
 0x12c   :  { %v165_v44 = vadd.f32 %v164_v31, %v120_v39 }
 0x131   :  { %v173_v33 = vpop.f32.mrf.mxu3 }
 0x132   :  { %v174_v34 = vadd.f32 %v173_v33, %v132_v32 }
 0x133   :  { %v167_v35 = vpop.f32.mrf.mxu1 }
 0x134   :  { %327 = vtanh.f32 %v174_v34  ;;  %v168_v42 = vadd.f32 %v167_v35, %v124_v37 }
 0x13a   :  { %v328_v38 = vpop.eup %327 }
 0x13b   :  { %v170_v41 = vpop.f32.mrf.mxu1  ;;  %225 = vmatpush.msra.mxu2 %v328_v38  ;;  %298 = vmatpush.msrb.mxu3 %v328_v38 }
 0x13c   :  { %v171_v43 = vadd.f32 %v170_v41, %v128_v40 }
 0x13e   :  { %329 = vtanh.f32 %v171_v43 }
 0x13f   :  { %331 = vtanh.f32 %v168_v42 }
 0x140   :  { %333 = vtanh.f32 %v165_v44 }
 0x144   :  { %v330_v45 = vpop.eup %329 }
 0x145   :  { %226 = vmatpush.msra.mxu2 %v330_v45  ;;  %299 = vmatpush.msrb.mxu3 %v330_v45  ;;  %v332_v46 = vpop.eup %331 }
 0x146   :  { %v334_v49 = vpop.eup %333 }
 0x147   :  { %227 = vmatpush.msra.mxu2 %v332_v46  ;;  %300 = vmatpush.msrb.mxu3 %v332_v46 }
 0x149   :  { %228 = vmatpush.msra.mxu2 %v334_v49  ;;  %301 = vmatpush.msrb.mxu3 %v334_v49 }
 0x14a   :  { %289 = vmatmul.msk.f32.vlgmr.msra.gmra.mxu2 %vm134_vm2, %v181_v47  ;;  %292 = vmatmul.msk.f32.vlgmr.msrb.gmra.mxu3 %vm134_vm2, %v184_v48 }
 0x152   :  { %290 = vmatmul.msk.f32.gmra.mxu2 %vm134_vm2, %v182_v50 }
 0x15a   :  { %291 = vmatmul.msk.f32.gmra.mxu2 %vm134_vm2, %v183_v51 }
 0x1cd   :  { %v230_v53 = vpop.f32.mrf.mxu2  ;;  %v239_v54 = vpop.f32.mrf.mxu3 }
 0x1ce   :  { %v240_v57 = vadd.f32 %v239_v54, %v199_v52  ;;  %v231_v2 = vadd.f32 %v230_v53, %v187_v62 }
 0x1d0   :  { %335 = vtanh.f32 %v240_v57 }
 0x1d5   :  { %v233_v58 = vpop.f32.mrf.mxu2 }
 0x1d6   :  { %v336_v59 = vpop.eup %335  ;;  %v234_v0 = vadd.f32 %v233_v58, %v191_v60 }
 0x1d7   :  { %266 = vmatpush.msra.mxu3 %v336_v59 }
 0x1dd   :  { %v236_v63 = vpop.f32.mrf.mxu2 }
 0x1de   :  { %v237_v1 = vadd.f32 %v236_v63, %v195_v61 }
 0x1e0   :  { %337 = vtanh.f32 %v237_v1 }
 0x1e1   :  { %339 = vtanh.f32 %v234_v0 }
 0x1e2   :  { %341 = vtanh.f32 %v231_v2 }
 0x1e6   :  { %v338_v3 = vpop.eup %337 }
 0x1e7   :  { %267 = vmatpush.msra.mxu3 %v338_v3  ;;  %v340_v4 = vpop.eup %339 }
 0x1e8   :  { %v342_v5 = vpop.eup %341 }
 0x1e9   :  { %268 = vmatpush.msra.mxu3 %v340_v4 }
 0x1eb   :  { %269 = vmatpush.msra.mxu3 %v342_v5 }
 0x1ec   :  { %293 = vmatmul.msk.f32.vlgmr.msra.gmra.mxu3 %vm134_vm2, %v37_v55 }
 0x26f   :  { %v271_v8 = vpop.f32.mrf.mxu3 }
 0x270   :  { %v272_v9 = vadd.f32 %v271_v8, %v251_v7 }
 0x272   :  { %274 = vst [vmem:[%s457_s4] sm:$0x1] %v272_v9 }
 0x273   :  { %279 = vsyncpa [#allocation3], 1 }

</bundles_post_ra>
